<compile_context>
chip_gen: v5e
topology: v5e:2x2
jax: 0.10.0
libtpu: 0.0.40
codegen_flags: <defaults>
</compile_context>

<pallas_src>
import jax
import jax.numpy as jnp
import numpy as np
from jax.experimental import pallas as pl
from jax.experimental.pallas import tpu as pltpu


def attention_kernel(q_ref, vals_ref, w1_ref, b1_ref, vw_ref, vb_ref,
                     ctx_ref, score_ref):
    # q_ref:    (TB, S, IN)   batch-block of queries (bf16)
    # vals_ref: (TB, S, D)    batch-block of values  (bf16)
    # w1_ref:   (IN, OUT)     W1 weight, pre-transposed (in, out) (bf16)
    # b1_ref:   (1, OUT)      W1 bias (f32 row)
    # vw_ref:   (1, OUT)      V weight as a lane-dense f32 row
    # vb_ref:   (1, 1)        V bias (f32)
    # ctx_ref:  (TB, D)       context vectors (lane-dense, f32)
    # score_ref:(TB, S)       raw sigmoid scores (lane-dense; (B,S,1) in wrapper)
    TB, S, IN = q_ref.shape
    OUT = w1_ref.shape[1]

    # --- W1 linear + tanh: fold the batch block into M = TB*S rows so one MXU
    # matmul covers the whole block (bf16 inputs, f32 accumulation).
    q2 = q_ref[...].reshape(TB * S, IN)
    h = jnp.tanh(
        jnp.dot(q2, w1_ref[...], preferred_element_type=jnp.float32)
        + b1_ref[...]
    )                                                        # (TB*S, OUT) f32

    # --- V linear has output width 1 -> VPU multiply + lane reduce instead of
    # an N=1 MXU matmul.  The reshape below only splits the majormost dim
    # (S stays the sublane dim), so it is layout-preserving, not a copy.
    h3 = h.reshape(TB, S, OUT)
    logits = jnp.sum(h3 * vw_ref[...], axis=-1) + vb_ref[...]    # (TB, S)
    score = jax.nn.sigmoid(logits)                               # (TB, S) f32

    # --- Context: un-normalised VPU broadcast-multiply + XLU sublane reduce
    # over the sequence axis (no M=1 MXU matmuls / result-FIFO serialisation),
    # then one *exact* divide on the small (TB, D) result.  Attention weights
    # never materialise and no approximate reciprocal is used.
    ctx_raw = jnp.sum(score[:, :, None] * vals_ref[...], axis=1)  # (TB, D) f32
    sum_score = jnp.sum(score, axis=-1, keepdims=True)            # (TB, 1) f32
    ctx_ref[...] = (ctx_raw / sum_score).astype(ctx_ref.dtype)
    score_ref[...] = score.astype(score_ref.dtype)


def _round_up(x, m):
    return ((x + m - 1) // m) * m


def _pick_block_batch(B, S, IN, D, OUT, in_bytes=2,
                      block_budget_bytes=12 * 1024 * 1024):
    """Pick the batch-block size TB from a VMEM byte budget.

    Budget covers the double-buffered q/values input blocks, the
    double-buffered ctx/score output blocks, and the live f32 intermediates
    (hidden h and the score*values product).  TB is kept a multiple of 8
    (sublane-aligned (TB,S)/(TB,D) output blocks), and for large B it is
    capped so grid >= 2 (both v7x TensorCores get work).
    """
    per_row = (2 * S * (IN + D) * in_bytes   # q + values blocks, x2 buffers
               + 2 * (S + D) * 4             # ctx + score output blocks, x2 buffers
               + S * OUT * 4                 # live f32 hidden h
               + S * D * 4                   # live f32 score*values product
               + 2 * S * 4)                  # logits / score slack
    tb_vmem = max(1, block_budget_bytes // per_row)

    # Small problems: one grid step with the whole batch (block == full dim,
    # so no multiple-of-8 requirement and no padding needed).
    if B * S <= 2048 and B <= tb_vmem:
        return B

    # Multiple-of-8 TB within the VMEM budget.
    tb = max(8, (tb_vmem // 8) * 8)
    # Leave at least 2 grid steps for megacore sharding when B is big enough.
    if B > 8:
        tb = min(tb, _round_up((B + 1) // 2, 8))
    # Nudge TB*S toward a multiple of 256 rows (whole v6e/v7x MXU passes).
    if (tb * S) % 256 != 0 and tb * S > 256:
        aligned = ((tb * S) // 256 * 256) // S
        aligned = (aligned // 8) * 8
        if aligned >= 8 and (aligned * S) % 256 == 0:
            tb = aligned
    return tb


def attention_forward(query, values, w1, b1, vw, vb,
                      *, compute_dtype=jnp.bfloat16):
    """query: (B, S, IN), values: (B, S, D).

    Returns (context (B, D), score (B, S, 1)) — same semantics as the PyTorch
    module's forward.  Heavy inputs are cast to `compute_dtype` (bf16) since
    the kernel is HBM-bandwidth bound; accumulation stays f32.
    """
    B, S, IN = query.shape
    D = values.shape[-1]
    OUT = w1.shape[1]

    q = query.astype(compute_dtype)
    vals = values.astype(compute_dtype)
    w1c = w1.astype(compute_dtype)
    b1_2d = b1.reshape(1, OUT).astype(jnp.float32)
    vw_row = vw.reshape(1, OUT).astype(jnp.float32)   # (OUT, 1) -> lane-dense row
    vb_2d = vb.reshape(1, 1).astype(jnp.float32)

    in_bytes = jnp.dtype(compute_dtype).itemsize
    TB = _pick_block_batch(B, S, IN, D, OUT, in_bytes=in_bytes)

    # Pad the batch to a multiple of TB instead of falling back to one giant
    # block: padded rows produce harmless scores (normalisation is per-row)
    # and are trimmed from the outputs below.
    B_pad = _round_up(B, TB)
    if B_pad != B:
        pad = B_pad - B
        q = jnp.pad(q, ((0, pad), (0, 0), (0, 0)))
        vals = jnp.pad(vals, ((0, pad), (0, 0), (0, 0)))
    grid = (B_pad // TB,)

    ctx, score2d = pl.pallas_call(
        attention_kernel,
        out_shape=(
            jax.ShapeDtypeStruct((B_pad, D), jnp.float32),
            jax.ShapeDtypeStruct((B_pad, S), jnp.float32),   # lane-dense score
        ),
        grid_spec=pltpu.PrefetchScalarGridSpec(
            num_scalar_prefetch=0,
            grid=grid,
            in_specs=[
                pl.BlockSpec((TB, S, IN), lambda i: (i, 0, 0)),
                pl.BlockSpec((TB, S, D), lambda i: (i, 0, 0)),
                # Grid-invariant parameters: constant index maps, stay resident.
                # (pipeline_mode=pl.Buffered(1) would halve their VMEM on v7x;
                # left at the default double-buffering for compile safety.)
                pl.BlockSpec((IN, OUT), lambda i: (0, 0)),
                pl.BlockSpec((1, OUT), lambda i: (0, 0)),
                pl.BlockSpec((1, OUT), lambda i: (0, 0)),
                pl.BlockSpec((1, 1), lambda i: (0, 0)),
            ],
            out_specs=[
                pl.BlockSpec((TB, D), lambda i: (i, 0)),
                pl.BlockSpec((TB, S), lambda i: (i, 0)),
            ],
        ),
        compiler_params=pltpu.CompilerParams(
            dimension_semantics=("parallel",),
            # Raise the scoped VMEM limit (v5e default is only 16 MiB); the
            # 12 MiB block budget keeps this safe under v7x's 64 MiB physical.
            vmem_limit_bytes=32 * 1024 * 1024,
        ),
    )(q, vals, w1c, b1_2d, vw_row, vb_2d)

    # Trim batch padding and match the PyTorch module's score shape (B, S, 1).
    return ctx[:B], score2d[:B].reshape(B, S, 1)


def reference_forward(query, values, w1, b1, vw, vb):
    hp = jax.lax.Precision.HIGHEST
    h = jnp.tanh(jnp.einsum("bsi,io->bso", query, w1, precision=hp) + b1)
    score = jax.nn.sigmoid(jnp.einsum("bso,ol->bsl", h, vw, precision=hp) + vb)
    sum_score = jnp.sum(score, axis=1, keepdims=True)
    attn = score / sum_score
    ctx = jnp.sum(attn * values, axis=1)
    return ctx, score


if __name__ == "__main__":
    # Small shapes consistent with the module's forward:
    B, S = 2, 8            # batch, sequence length
    IN_UNITS = 32          # query feature dim (W1 in_units)
    OUT_UNITS = 32         # W1 out_units
    D = 32                 # values feature dim

    key = jax.random.PRNGKey(0)
    kq, kv, kw1, kb1, kvw, kvb = jax.random.split(key, 6)

    query = jax.random.normal(kq, (B, S, IN_UNITS), dtype=jnp.float32)
    values = jax.random.normal(kv, (B, S, D), dtype=jnp.float32)

    # Deterministic parameter init (Linear-like scale), stored pre-transposed (in, out).
    w1 = jax.random.uniform(kw1, (IN_UNITS, OUT_UNITS), dtype=jnp.float32,
                            minval=-1.0, maxval=1.0) / np.sqrt(IN_UNITS)
    b1 = jax.random.uniform(kb1, (OUT_UNITS,), dtype=jnp.float32,
                            minval=-1.0, maxval=1.0) / np.sqrt(IN_UNITS)
    vw = jax.random.uniform(kvw, (OUT_UNITS, 1), dtype=jnp.float32,
                            minval=-1.0, maxval=1.0) / np.sqrt(OUT_UNITS)
    vb = jax.random.uniform(kvb, (1,), dtype=jnp.float32,
                            minval=-1.0, maxval=1.0) / np.sqrt(OUT_UNITS)

    ctx, score = attention_forward(query, values, w1, b1, vw, vb)
    jax.block_until_ready((ctx, score))

    # Correctness check: the kernel uses bf16 inputs with f32 accumulation, so
    # the reference is evaluated on the same bf16-rounded inputs (upcast to
    # f32).  With the exact normalisation (no approx reciprocal) ctx matches
    # far tighter than the previous 2e-3 tolerance.
    q_r = query.astype(jnp.bfloat16).astype(jnp.float32)
    v_r = values.astype(jnp.bfloat16).astype(jnp.float32)
    w1_r = w1.astype(jnp.bfloat16).astype(jnp.float32)
    ctx_ref, score_ref = reference_forward(q_r, v_r, w1_r, b1, vw, vb)
    np.testing.assert_allclose(np.asarray(score), np.asarray(score_ref),
                               rtol=1e-5, atol=1e-5)
    np.testing.assert_allclose(np.asarray(ctx), np.asarray(ctx_ref),
                               rtol=1e-4, atol=1e-4)

    print("KERNEL_OK")
</pallas_src>

<mosaic_0001>
module attributes {stable_mosaic.version = 11 : i64} {
  func.func @attention_kernel(%arg0: i32, %arg1: memref<2x8x32xbf16, #tpu.memory_space<vmem>>, %arg2: memref<2x8x32xbf16, #tpu.memory_space<vmem>>, %arg3: memref<32x32xbf16, #tpu.memory_space<vmem>>, %arg4: memref<1x32xf32, #tpu.memory_space<vmem>>, %arg5: memref<1x32xf32, #tpu.memory_space<vmem>>, %arg6: memref<1x1xf32, #tpu.memory_space<vmem>>, %arg7: memref<2x32xf32, #tpu.memory_space<vmem>>, %arg8: memref<2x8xf32, #tpu.memory_space<vmem>>) attributes {dimension_semantics = [#tpu.dimension_semantics<parallel>], iteration_bounds = array<i64: 1>, scalar_prefetch = 0 : i64, scratch_operands = 0 : i64, tpu.core_type = #tpu.core_type<tc>, window_params = [{transform_indices = @transform_0, window_bounds = array<i64: 2, 8, 32>}, {transform_indices = @transform_1, window_bounds = array<i64: 2, 8, 32>}, {pipeline_mode = #tpu.pipeline_mode<synchronous>, transform_indices = @transform_2, window_bounds = array<i64: 32, 32>}, {pipeline_mode = #tpu.pipeline_mode<synchronous>, transform_indices = @transform_3, window_bounds = array<i64: 1, 32>}, {pipeline_mode = #tpu.pipeline_mode<synchronous>, transform_indices = @transform_4, window_bounds = array<i64: 1, 32>}, {pipeline_mode = #tpu.pipeline_mode<synchronous>, transform_indices = @transform_5, window_bounds = array<i64: 1, 1>}, {transform_indices = @transform_6, window_bounds = array<i64: 2, 32>}, {transform_indices = @transform_7, window_bounds = array<i64: 2, 8>}]} {
    %c0 = arith.constant 0 : index
    %c0_0 = arith.constant 0 : index
    %c0_1 = arith.constant 0 : index
    %0 = vector.load %arg1[%c0, %c0_0, %c0_1] : memref<2x8x32xbf16, #tpu.memory_space<vmem>>, vector<2x8x32xbf16>
    %1 = vector.shape_cast %0 : vector<2x8x32xbf16> to vector<16x32xbf16>
    %c0_2 = arith.constant 0 : index
    %c0_3 = arith.constant 0 : index
    %2 = vector.load %arg3[%c0_2, %c0_3] : memref<32x32xbf16, #tpu.memory_space<vmem>>, vector<32x32xbf16>
    %cst = arith.constant dense<0.000000e+00> : vector<16x32xf32>
    %3 = tpu.matmul %1, %2, %cst {dimension_numbers = #tpu.dot_dimension_numbers<[1], [0], [0], [1], [0, 0, 1, 1], [], []>} : vector<16x32xbf16>, vector<32x32xbf16>, vector<16x32xf32> -> vector<16x32xf32>
    %c0_4 = arith.constant 0 : index
    %c0_5 = arith.constant 0 : index
    %4 = vector.load %arg4[%c0_4, %c0_5] : memref<1x32xf32, #tpu.memory_space<vmem>>, vector<1x32xf32>
    %5 = vector.broadcast %4 : vector<1x32xf32> to vector<16x32xf32>
    %6 = arith.addf %3, %5 : vector<16x32xf32>
    %7 = math.tanh %6 : vector<16x32xf32>
    %8 = vector.shape_cast %7 : vector<16x32xf32> to vector<2x8x32xf32>
    %c0_6 = arith.constant 0 : index
    %c0_7 = arith.constant 0 : index
    %9 = vector.load %arg5[%c0_6, %c0_7] : memref<1x32xf32, #tpu.memory_space<vmem>>, vector<1x32xf32>
    %10 = vector.shape_cast %9 : vector<1x32xf32> to vector<1x1x32xf32>
    %11 = vector.broadcast %10 : vector<1x1x32xf32> to vector<2x8x32xf32>
    %12 = arith.mulf %8, %11 : vector<2x8x32xf32>
    %cst_8 = arith.constant dense<0.000000e+00> : vector<2x8xf32>
    %13 = vector.multi_reduction <add>, %12, %cst_8 [2] : vector<2x8x32xf32> to vector<2x8xf32>
    %c0_9 = arith.constant 0 : index
    %c0_10 = arith.constant 0 : index
    %14 = vector.load %arg6[%c0_9, %c0_10] : memref<1x1xf32, #tpu.memory_space<vmem>>, vector<1x1xf32>
    %15 = vector.broadcast %14 : vector<1x1xf32> to vector<2x8xf32>
    %16 = arith.addf %13, %15 : vector<2x8xf32>
    %17 = arith.negf %16 : vector<2x8xf32>
    %18 = math.exp %17 : vector<2x8xf32>
    %cst_11 = arith.constant 1.000000e+00 : f32
    %19 = vector.broadcast %cst_11 : f32 to vector<2x8xf32>
    %20 = arith.addf %19, %18 : vector<2x8xf32>
    %21 = arith.divf %19, %20 : vector<2x8xf32>
    %22 = vector.shape_cast %21 : vector<2x8xf32> to vector<2x8x1xf32>
    %c0_12 = arith.constant 0 : index
    %c0_13 = arith.constant 0 : index
    %c0_14 = arith.constant 0 : index
    %23 = vector.load %arg2[%c0_12, %c0_13, %c0_14] : memref<2x8x32xbf16, #tpu.memory_space<vmem>>, vector<2x8x32xbf16>
    %24 = arith.extf %23 : vector<2x8x32xbf16> to vector<2x8x32xf32>
    %25 = vector.broadcast %22 : vector<2x8x1xf32> to vector<2x8x32xf32>
    %26 = arith.mulf %25, %24 : vector<2x8x32xf32>
    %cst_15 = arith.constant dense<0.000000e+00> : vector<2x32xf32>
    %27 = vector.multi_reduction <add>, %26, %cst_15 [1] : vector<2x8x32xf32> to vector<2x32xf32>
    %cst_16 = arith.constant dense<0.000000e+00> : vector<2xf32>
    %28 = vector.multi_reduction <add>, %21, %cst_16 [1] : vector<2x8xf32> to vector<2xf32>
    %29 = vector.shape_cast %28 : vector<2xf32> to vector<2x1xf32>
    %30 = vector.broadcast %29 : vector<2x1xf32> to vector<2x32xf32>
    %31 = arith.divf %27, %30 : vector<2x32xf32>
    %c0_17 = arith.constant 0 : index
    %c0_18 = arith.constant 0 : index
    %32 = vector.load %arg7[%c0_17, %c0_18] : memref<2x32xf32, #tpu.memory_space<vmem>>, vector<2x32xf32>
    tpu.vector_store %arg7[%c0_17, %c0_18], %31 {strides = array<i32>} : memref<2x32xf32, #tpu.memory_space<vmem>>, vector<2x32xf32>,
    %c0_19 = arith.constant 0 : index
    %c0_20 = arith.constant 0 : index
    %33 = vector.load %arg8[%c0_19, %c0_20] : memref<2x8xf32, #tpu.memory_space<vmem>>, vector<2x8xf32>
    tpu.vector_store %arg8[%c0_19, %c0_20], %21 {strides = array<i32>} : memref<2x8xf32, #tpu.memory_space<vmem>>, vector<2x8xf32>,
    return
  }
  func.func @transform_0(%arg0: i32) -> (i32, i32, i32) {
    %c0_i32 = arith.constant 0 : i32
    %c0_i32_0 = arith.constant 0 : i32
    %c0_i32_1 = arith.constant 0 : i32
    return %arg0, %c0_i32, %c0_i32_0 : i32, i32, i32
  }
  func.func @transform_1(%arg0: i32) -> (i32, i32, i32) {
    %c0_i32 = arith.constant 0 : i32
    %c0_i32_0 = arith.constant 0 : i32
    %c0_i32_1 = arith.constant 0 : i32
    return %arg0, %c0_i32, %c0_i32_0 : i32, i32, i32
  }
  func.func @transform_2(%arg0: i32) -> (i32, i32) {
    %c0_i32 = arith.constant 0 : i32
    %c0_i32_0 = arith.constant 0 : i32
    %c0_i32_1 = arith.constant 0 : i32
    return %c0_i32, %c0_i32_0 : i32, i32
  }
  func.func @transform_3(%arg0: i32) -> (i32, i32) {
    %c0_i32 = arith.constant 0 : i32
    %c0_i32_0 = arith.constant 0 : i32
    %c0_i32_1 = arith.constant 0 : i32
    return %c0_i32, %c0_i32_0 : i32, i32
  }
  func.func @transform_4(%arg0: i32) -> (i32, i32) {
    %c0_i32 = arith.constant 0 : i32
    %c0_i32_0 = arith.constant 0 : i32
    %c0_i32_1 = arith.constant 0 : i32
    return %c0_i32, %c0_i32_0 : i32, i32
  }
  func.func @transform_5(%arg0: i32) -> (i32, i32) {
    %c0_i32 = arith.constant 0 : i32
    %c0_i32_0 = arith.constant 0 : i32
    %c0_i32_1 = arith.constant 0 : i32
    return %c0_i32, %c0_i32_0 : i32, i32
  }
  func.func @transform_6(%arg0: i32) -> (i32, i32) {
    %c0_i32 = arith.constant 0 : i32
    %c0_i32_0 = arith.constant 0 : i32
    return %arg0, %c0_i32 : i32, i32
  }
  func.func @transform_7(%arg0: i32) -> (i32, i32) {
    %c0_i32 = arith.constant 0 : i32
    %c0_i32_0 = arith.constant 0 : i32
    return %arg0, %c0_i32 : i32, i32
  }
}

</mosaic_0001>

<bundles_post_ra>
// kernel: tpu_custom_call.1
= control target key start
LH: loop header
LB: loop body
LE: loop exit
PB: predicated region body
PF: predicated region fallthrough
CT: control target
= control target key end

     0   :  { %s550_s0 = inlined_call_operand.hbm [shape: bf16[2,8,32], index: 0, kind: input, shape index: {}]   ;;  %s551_s1 = inlined_call_operand.hbm [shape: bf16[2,8,32], index: 1, kind: input, shape index: {}]   ;;  %s552_s2 = inlined_call_operand.hbm [shape: bf16[32,32], index: 2, kind: input, shape index: {}]   ;;  %s553_s3 = inlined_call_operand.vmem [shape: f32[1,32], index: 3, kind: input, shape index: {}]   ;;  %s554_s4 = inlined_call_operand.vmem [shape: f32[1,32], index: 4, kind: input, shape index: {}]   ;;  %s555_s5 = inlined_call_operand.<no memory space> [shape: f32[1,1], index: 5, kind: input, shape index: {}]   ;;  %s556_s6 = inlined_call_operand.hbm [shape: f32[2,32], index: 6, kind: output, shape index: {0}]   ;;  %s557_s7 = inlined_call_operand.hbm [shape: f32[2,8], index: 7, kind: output, shape index: {1}]  }
   0x1   :  { %v13_v0 = vstv %s555_s5 }
   0x2   :  { %14 = vst [vmem:[#allocation2] sm:$0x1] %v13_v0 }
   0x3   :  { %15 = vsyncpa [#allocation4], 0 }
   0x4   :  { %16 = vsyncpa [#allocation7], 0 }
   0x5   :  { %17 = vsyncpa [#allocation5], 0 }
   0x6   :  { %18 = vsyncpa [#allocation11], 0  ;;  %s36_s28 = sshll.u32 %s551_s1, 4  ;;  %s471_s29 = smov [#allocation6]   ;;  %s37_s28 = int_to_ptr.hbm [resolvable:$true] %s36_s28 }
   0x7   :  { %s38_s30 = sshll.u32 %s471_s29, 4  ;;  %s23_s10 = sshll.u32 %s550_s0, 4  ;;  %s39_s30 = int_to_ptr.vmem [resolvable:$true] %s38_s30  ;;  %s24_s10 = int_to_ptr.hbm [resolvable:$true] %s23_s10 }
   0x8   :  { %s472_s11 = smov 64   ;;  %s473_s12 = smov 4  }
   0x9   :  { %44 = dma.hbm_to_vmem [thread:$0]  %s37_s28, 128, %s39_s30, [#allocation7], %s472_s11, %s472_s11, %s473_s12  }
   0xa   :  { %s474_s5 = smov [#allocation3]   ;;  %s49_s16 = sshll.u32 %s552_s2, 4  ;;  %s50_s16 = int_to_ptr.hbm [resolvable:$true] %s49_s16 }
   0xb   :  { %s25_s13 = sshll.u32 %s474_s5, 4  ;;  %s475_s1 = smov [#allocation8]   ;;  %s26_s13 = int_to_ptr.vmem [resolvable:$true] %s25_s13 }
   0xc   :  { %31 = dma.hbm_to_vmem [thread:$0]  %s24_s10, 128, %s26_s13, [#allocation4], %s472_s11, %s472_s11, %s473_s12  }
   0xd   :  { %s51_s17 = sshll.u32 %s475_s1, 4  ;;  %s52_s17 = int_to_ptr.vmem [resolvable:$true] %s51_s17 }
   0xe   :  { %57 = dma.hbm_to_vmem [thread:$0]  %s50_s16, 256, %s52_s17, [#allocation7], %s472_s11, %s472_s11, %s473_s12  }
   0xf   :  { %463 = dma.done.wait [#allocation4], 128  }
  0x10   :  { %464 = vsyncadd [#allocation4], 4294967168 }
  0x11   :  { %465 = dma.done.wait [#allocation7], 384  }
  0x12   :  { %466 = vsyncadd [#allocation7], 4294966912  ;;  %v309_v1 = vld [vmem:[#allocation8 + $0x8] sm:$0xff]  ;;  %v308_v2 = vld [vmem:[#allocation8] sm:$0xff]  ;;  %vm104_vm0 = vcmask 261120   ;;  %v476_v4 = vmov 0   ;;  %v205_v39 = vlaneseq }
  0x13   :  { %114 = vmatpush.bf16.msra.mxu0 %v309_v1  ;;  %v307_v3 = vld [vmem:[#allocation3] sm:$0xff]  ;;  %322 = vset.pattern.permute.xlu1 %v476_v4  ;;  %v326_v5 = vld [vmem:[#allocation2] ss:$0 sm:$0xff]  ;;  %vm209_vm9 = vcmask 1041409   ;;  %vm212_vm10 = vcmask 58368   ;;  %s276_s22 = sshll.u32 %s557_s7, 4  ;;  %s277_s22 = int_to_ptr.hbm [resolvable:$true] %s276_s22 }
  0x14   :  { %323 = vset.pattern.permute.xlu0 %v476_v4  ;;  %140 = vperm.xlu1 %322, %v326_v5   ;;  %v324_v6 = vld [vmem:[%s553_s3] ss:$0 sm:$0xff]  ;;  %v206_v46 = vand.u32 127, %v205_v39  ;;  %s477_s3 = smov [#allocation10]   ;;  %v311_v55 = vld [vmem:[#allocation6] sm:$0xff]   ;;  %s478_s7 = smov [#allocation9]  }
  0x15   :  { %v325_v9 = vld [vmem:[%s554_s4] ss:$0 sm:$0xff]  ;;  %s274_s4 = sshll.u32 %s477_s3, 4  ;;  %v313_v56 = vunpack.c.h.bf16 %v311_v55  ;;  %v312_v57 = vunpack.c.l.bf16 %v311_v55  ;;  %s263_s23 = sshll.u32 %s478_s7, 4  ;;  %s275_s4 = int_to_ptr.vmem [resolvable:$true] %s274_s4  ;;  %s264_s23 = int_to_ptr.vmem [resolvable:$true] %s263_s23 }
  0x16   :  { %s265_s26 = sshll.u32 %s556_s6, 4  ;;  %s266_s26 = int_to_ptr.hbm [resolvable:$true] %s265_s26 }
  0x17   :  { %115 = vmatpush.bf16.msra.mxu0 %v308_v2 }
  0x1a   :  { %304 = vmatmul.msk.bf16.vlgmr.msra.gmra.mxu0 %vm104_vm0, %v307_v3 }
  0x86   :  { %v141_v18 = vpop.permute.xlu1 %140 }
  0x97   :  { %v117_v7 = vpop.f32.mrf.mxu0 }
  0x98   :  { %v118_v8 = vadd.f32 %v324_v6, %v117_v7 }
  0x9a   :  { %327 = vtanh.f32 %v118_v8 }
  0x9f   :  { %v119_v10 = vpop.f32.mrf.mxu0 }
  0xa0   :  { %v328_v11 = vpop.eup %327  ;;  %v120_v12 = vadd.f32 %v324_v6, %v119_v10 }
  0xa1   :  { %v128_v13 = vmul.f32 %v328_v11, %v325_v9 }
  0xa2   :  { %329 = vtanh.f32 %v120_v12 }
  0xa3   :  { %v130_v14 = vsel %vm104_vm0, %v128_v13, 0.0 }
  0xa4   :  { %131 = vadd.xlane.f32.xlu0 %v130_v14 }
  0xa8   :  { %v330_v15 = vpop.eup %329 }
  0xa9   :  { %v129_v16 = vmul.f32 %v330_v15, %v325_v9 }
  0xab   :  { %v133_v17 = vsel %vm104_vm0, %v129_v16, 0.0 }
  0xac   :  { %134 = vadd.xlane.f32.xlu0 %v133_v17 }
 0x117   :  { %v132_v19 = vpop.xlane.xlu0 %131 }
 0x118   :  { %v143_v20 = vadd.f32 %v141_v18, %v132_v19 }
 0x11a   :  { %v305_v21 = vmul.f32 -1.442695, %v143_v20 }
 0x11c   :  { %331 = vpow2.f32 %v305_v21 }
 0x11f   :  { %v135_v22 = vpop.xlane.xlu0 %134 }
 0x120   :  { %v144_v23 = vadd.f32 %v141_v18, %v135_v22 }
 0x122   :  { %v332_v24 = vpop.eup %331  ;;  %v306_v25 = vmul.f32 -1.442695, %v144_v23 }
 0x123   :  { %v151_v26 = vadd.f32 1.0, %v332_v24 }
 0x124   :  { %333 = vpow2.f32 %v306_v25 }
 0x125   :  { %335 = vrcp.f32 %v151_v26  ;;  %v164_v36 = vand.u32 2147483648, %v151_v26  ;;  %vm158_vm2 = vweird.f32 %v151_v26  ;;  %v162_v38 = vand.u32 2147483647, %v151_v26 }
 0x127   :  { %v165_v44 = vor.u32 1.1754944e-38, %v164_v36  ;;  %vm163_vm5 = vcmp.eq.f32.partialorder %v162_v38, 8.507059e+37 }
 0x12a   :  { %v334_v27 = vpop.eup %333 }
 0x12b   :  { %v336_v28 = vpop.eup %335  ;;  %v152_v29 = vadd.f32 1.0, %v334_v27 }
 0x12c   :  { %v154_v30 = vmul.f32 %v336_v28, %v151_v26  ;;  %vm159_vm1 = vweird.f32 %v336_v28 }
 0x12d   :  { %337 = vrcp.f32 %v152_v29  ;;  %vm160_vm3 = vmor %vm158_vm2, %vm159_vm1  ;;  %v179_v40 = vand.u32 2147483648, %v152_v29  ;;  %v177_v43 = vand.u32 2147483647, %v152_v29  ;;  %vm173_vm6 = vweird.f32 %v152_v29 }
 0x12e   :  { %v155_v31 = vsub.f32 1.0, %v154_v30 }
 0x12f   :  { %v180_v48 = vor.u32 1.1754944e-38, %v179_v40  ;;  %vm178_vm8 = vcmp.eq.f32.partialorder %v177_v43, 8.507059e+37 }
 0x130   :  { %v156_v32 = vmul.f32 %v336_v28, %v155_v31 }
 0x132   :  { %v157_v35 = vadd.f32 %v336_v28, %v156_v32 }
 0x133   :  { %v338_v33 = vpop.eup %337 }
 0x134   :  { %v169_v34 = vmul.f32 %v338_v33, %v152_v29  ;;  %v161_v41 = vsel %vm160_vm3, %v336_v28, %v157_v35  ;;  %vm174_vm4 = vweird.f32 %v338_v33  ;;  %vm255_vm3 = vcmask 254976  }
 0x135   :  { %v166_v47 = vsel %vm163_vm5, %v165_v44, %v161_v41  ;;  %vm175_vm7 = vmor %vm173_vm6, %vm174_vm4 }
 0x136   :  { %v170_v37 = vsub.f32 1.0, %v169_v34  ;;  %v207_v51 = vperm.slane %v166_v47, %v206_v46  ;;  %v187_v59 = vmul.f32 %v312_v57, %v166_v47 }
 0x138   :  { %v171_v42 = vmul.f32 %v338_v33, %v170_v37  ;;  %v189_v61 = vsel %vm104_vm0, %v187_v59, 0.0 }
 0x139   :  { %v190_v63 = vrot.slane %v189_v61, 4 }
 0x13a   :  { %v172_v45 = vadd.f32 %v338_v33, %v171_v42 }
 0x13b   :  { %v191_v3 = vadd.f32 %v190_v63, %v189_v61 }
 0x13c   :  { %v176_v49 = vsel %vm175_vm7, %v338_v33, %v172_v45 }
 0x13d   :  { %v181_v50 = vsel %vm178_vm8, %v180_v48, %v176_v49  ;;  %v192_v6 = vrot.slane %v191_v3, 2 }
 0x13e   :  { %v208_v52 = vperm.slane %v181_v50, %v206_v46  ;;  %v188_v58 = vmul.f32 %v313_v56, %v181_v50 }
 0x13f   :  { %v193_v12 = vadd.f32 %v192_v6, %v191_v3 }
 0x140   :  { %v210_v53 = vsel %vm209_vm9, %v208_v52, %v207_v51  ;;  %v196_v60 = vsel %vm104_vm0, %v188_v58, 0.0 }
 0x141   :  { %v213_v54 = vsel %vm212_vm10, %v210_v53, 0.0  ;;  %257 = vst.msk [vmem:[#allocation10] sm:$0x3] %vm212_vm10, %v210_v53  ;;  %v197_v62 = vrot.slane %v196_v60, 4  ;;  %v194_v23 = vrot.slane %v193_v12, 1 }
 0x142   :  { %214 = vadd.xlane.f32.xlu1 %v213_v54  ;;  %279 = dma.vmem_to_hbm [thread:$0]  %s275_s4, 32, %s277_s22, [#allocation11]  }
 0x143   :  { %v198_v0 = vadd.f32 %v197_v62, %v196_v60  ;;  %v195_v31 = vadd.f32 %v194_v23, %v193_v12 }
 0x145   :  { %v199_v4 = vrot.slane %v198_v0, 2 }
 0x147   :  { %v200_v7 = vadd.f32 %v199_v4, %v198_v0 }
 0x149   :  { %v201_v15 = vrot.slane %v200_v7, 1 }
 0x14b   :  { %v202_v27 = vadd.f32 %v201_v15, %v200_v7 }
 0x1b5   :  { %v215_v1 = vpop.xlane.xlu1 %214 }
 0x1b6   :  { %v217_v2 = vrot.slane %v215_v1, 1  ;;  %339 = vrcp.f32 %v215_v1  ;;  %vm225_vm12 = vweird.f32 %v215_v1  ;;  %v229_v16 = vand.u32 2147483647, %v215_v1 }
 0x1b7   :  { %v231_v17 = vand.u32 2147483648, %v215_v1 }
 0x1b8   :  { %341 = vrcp.f32 %v217_v2  ;;  %v246_v18 = vand.u32 2147483648, %v217_v2  ;;  %v244_v21 = vand.u32 2147483647, %v217_v2  ;;  %vm240_vm15 = vweird.f32 %v217_v2 }
 0x1b9   :  { %v232_v25 = vor.u32 1.1754944e-38, %v231_v17  ;;  %vm230_vm1 = vcmp.eq.f32.partialorder %v229_v16, 8.507059e+37 }
 0x1ba   :  { %v247_v26 = vor.u32 1.1754944e-38, %v246_v18  ;;  %vm245_vm2 = vcmp.eq.f32.partialorder %v244_v21, 8.507059e+37 }
 0x1bc   :  { %v340_v5 = vpop.eup %339 }
 0x1bd   :  { %v221_v8 = vmul.f32 %v340_v5, %v215_v1  ;;  %vm226_vm11 = vweird.f32 %v340_v5 }
 0x1be   :  { %v342_v9 = vpop.eup %341  ;;  %vm227_vm14 = vmor %vm225_vm12, %vm226_vm11 }
 0x1bf   :  { %v222_v10 = vsub.f32 1.0, %v221_v8  ;;  %v236_v11 = vmul.f32 %v342_v9, %v217_v2  ;;  %vm241_vm13 = vweird.f32 %v342_v9 }
 0x1c0   :  { %vm242_vm0 = vmor %vm240_vm15, %vm241_vm13 }
 0x1c1   :  { %v223_v13 = vmul.f32 %v340_v5, %v222_v10  ;;  %v237_v14 = vsub.f32 1.0, %v236_v11 }
 0x1c3   :  { %v224_v19 = vadd.f32 %v340_v5, %v223_v13  ;;  %v238_v20 = vmul.f32 %v342_v9, %v237_v14 }
 0x1c5   :  { %v228_v22 = vsel %vm227_vm14, %v340_v5, %v224_v19  ;;  %v239_v24 = vadd.f32 %v342_v9, %v238_v20 }
 0x1c6   :  { %v233_v29 = vsel %vm230_vm1, %v232_v25, %v228_v22 }
 0x1c7   :  { %v243_v28 = vsel %vm242_vm0, %v342_v9, %v239_v24  ;;  %v234_v33 = vmul.f32 %v233_v29, %v195_v31 }
 0x1c8   :  { %v248_v30 = vsel %vm245_vm2, %v247_v26, %v243_v28 }
 0x1c9   :  { %v249_v32 = vmul.f32 %v248_v30, %v202_v27 }
 0x1cb   :  { %v252_v34 = vrot.slane %v249_v32, 7 }
 0x1cd   :  { %v253_v35 = vsel %vm209_vm9, %v252_v34, %v234_v33 }
 0x1ce   :  { %256 = vst.msk [vmem:[#allocation9] sm:$0x3] %vm255_vm3, %v253_v35 }
 0x1cf   :  { %268 = dma.vmem_to_hbm [thread:$0]  %s264_s23, 32, %s266_s26, [#allocation5]  }
 0x1d0   :  { %467 = dma.done.wait [#allocation5], 32  }
 0x1d1   :  { %468 = vsyncadd [#allocation5], 4294967264 }
 0x1d2   :  { %469 = dma.done.wait [#allocation11], 32  }
 0x1d3   :  { %470 = vsyncadd [#allocation11], 4294967264 }
 0x1d4   :  { %288 = vsyncpa [#allocation4], 1 }
 0x1d5   :  { %289 = vsyncpa [#allocation7], 1 }
 0x1d6   :  { %290 = vsyncpa [#allocation5], 1 }
 0x1d7   :  { %291 = vsyncpa [#allocation11], 1 }

</bundles_post_ra>
